<compile_context>
chip_gen: v6e
topology: v6e:2x2x1
jax: 0.10.0
libtpu: 0.0.40
codegen_flags: <defaults>
</compile_context>

<pallas_src>
import functools

import jax
import jax.numpy as jnp
import numpy as np
from jax import lax
from jax.experimental import pallas as pl
from jax.experimental.pallas import tpu as pltpu


def _elu(x):
    # F.elu, alpha=1.0 (exp(x)-1 kept for Mosaic-lowering safety vs expm1).
    return jnp.where(x > 0, x, jnp.exp(x) - 1.0)


# --------------------------- Stage 1: embeddings -----------------------------

def _embed_kernel(w_ref, x_ref, h_ref, ht_ref, *, nlayers):
    """Row-tiled: x @ diag(w_l) per layer, ELU between layers, L2 normalize.

    Also writes the transposed tile into the (isize, N) hT output so Stage 2
    gets a pre-transposed, lane-dense RHS (transpose runs once per row tile
    here instead of once per output tile in Stage 2).
    """
    h = x_ref[...].astype(jnp.float32)
    for li in range(nlayers):
        h = h * w_ref[li, :][None, :]
        if li != nlayers - 1:
            h = _elu(h)
    # F.normalize(h, dim=1, p=2), torch eps = 1e-12
    norm = jnp.sqrt(jnp.sum(h * h, axis=1, keepdims=True))
    h = h / jnp.maximum(norm, 1e-12)
    h_ref[...] = h
    ht_ref[...] = h.T


# -------------------- Stage 2: similarity + top-k + ReLU ---------------------

def _row_kth_threshold(s, topk):
    """(k+1)-th largest value per row of s (ties collapse together, as before).

    Read-only masked-max scan: each pass is where(s < m) -> row-max; no
    full-tile `work` rewrite is stored back to VMEM and there is no extra
    running-min carry (row-max is monotonically non-increasing).
    """
    neg = jnp.float32(-jnp.inf)
    m = jnp.max(s, axis=1, keepdims=True)
    if topk <= 8:
        for _ in range(topk - 1):
            m = jnp.max(jnp.where(s < m, s, neg), axis=1, keepdims=True)
    else:
        def body(_, m):
            return jnp.max(jnp.where(s < m, s, neg), axis=1, keepdims=True)
        m = lax.fori_loop(0, topk - 1, body, m, unroll=True)
    return m


def _similarity_kernel(hrow_ref, ht_ref, out_ref, *, topk, cast_bf16):
    a = hrow_ref[...]
    b = ht_ref[...]
    if cast_bf16:
        a = a.astype(jnp.bfloat16)
        b = b.astype(jnp.bfloat16)
    # [tm, K] x [K, N]: natural MXU layout (RHS pre-transposed in Stage 1).
    s = lax.dot_general(
        a, b,
        dimension_numbers=(((1,), (0,)), ((), ())),
        preferred_element_type=jnp.float32,
    )
    thresh = _row_kth_threshold(s, topk)
    # Fused mask * value * ReLU epilogue: single lane-dense store.
    out_ref[...] = jnp.where(s >= thresh, jnp.maximum(s, 0.0), 0.0)


# ------------------------------- host wrapper --------------------------------

def _round_up(v, m):
    return ((v + m - 1) // m) * m


def _vmem_capacity_bytes():
    try:
        return int(pltpu.get_tpu_info().vmem_capacity_bytes)
    except Exception:
        return 128 << 20  # assume a 128 MiB-class part if the query fails


def _vmem_estimate_bytes(tm, n_pad, isize_pad):
    out_bufs = 2 * tm * n_pad * 4        # double-buffered output tile
    s_tmp = 2 * tm * n_pad * 4           # s + one masked-max temporary
    rhs = 2 * isize_pad * n_pad * 4      # hT (pipelined buffers)
    lhs = 2 * tm * isize_pad * 4         # h row tile (double-buffered)
    return out_bufs + s_tmp + rhs + lhs


def _pick_row_tile(n_pad, isize_pad, budget):
    for tm in (512, 256, 128, 64, 32, 16, 8):
        if tm <= n_pad and n_pad % tm == 0 and \
                _vmem_estimate_bytes(tm, n_pad, isize_pad) <= budget:
            return tm
    return 8


def att_learner_forward(features, weights, k, *, use_bf16_matmul=False):
    """features: (N, isize) float32; weights: (nlayers, isize) float32."""
    n, isize = features.shape
    nlayers = weights.shape[0]

    # Pad node dim to a lane-dense multiple of 128 and feature dim to a
    # sublane-friendly multiple of 8.  Zero-padded rows/columns only displace
    # negative entries from a row's top-(k+1), which the ReLU zeroes anyway,
    # so the sliced result is unchanged.
    n_pad = max(128, _round_up(n, 128))
    isize_pad = max(8, _round_up(isize, 8))
    if (n_pad, isize_pad) != (n, isize):
        features = jnp.pad(features, ((0, n_pad - n), (0, isize_pad - isize)))
    if isize_pad != isize:
        weights = jnp.pad(weights, ((0, 0), (0, isize_pad - isize)))

    # Generation-aware VMEM budgeting.
    cap = _vmem_capacity_bytes()
    if cap >= (96 << 20):          # v5e / v6e class: 128 MiB VMEM
        tile_budget = 88 << 20
        limit_cap = 100 << 20
    else:                          # v7x class: 64 MiB VMEM per TensorCore
        tile_budget = int(cap * 0.42)
        limit_cap = int(cap * 0.75)

    # --- Stage 1: normalized embeddings h + pre-transposed hT ---------------
    tm1 = 128
    for cand in (1024, 512, 256, 128):
        if n_pad % cand == 0:
            tm1 = cand
            break
    h, ht = pl.pallas_call(
        functools.partial(_embed_kernel, nlayers=nlayers),
        out_shape=(
            jax.ShapeDtypeStruct((n_pad, isize_pad), jnp.float32),
            jax.ShapeDtypeStruct((isize_pad, n_pad), jnp.float32),
        ),
        grid_spec=pltpu.PrefetchScalarGridSpec(
            num_scalar_prefetch=0,
            grid=(n_pad // tm1,),
            in_specs=[
                pl.BlockSpec((nlayers, isize_pad), lambda i: (0, 0)),
                pl.BlockSpec((tm1, isize_pad), lambda i: (i, 0)),
            ],
            out_specs=(
                pl.BlockSpec((tm1, isize_pad), lambda i: (i, 0)),
                pl.BlockSpec((isize_pad, tm1), lambda i: (0, i)),
            ),
        ),
        compiler_params=pltpu.CompilerParams(
            dimension_semantics=("parallel",),
        ),
    )(weights, features)

    # --- Stage 2: row-tiled similarity + top-(k+1) threshold + ReLU ---------
    tm = _pick_row_tile(n_pad, isize_pad, tile_budget)
    est = _vmem_estimate_bytes(tm, n_pad, isize_pad)
    vmem_limit = int(max(32 << 20, min(est + (8 << 20), limit_cap)))
    if vmem_limit < est:
        vmem_limit = int(est + (2 << 20))

    sim = pl.pallas_call(
        functools.partial(_similarity_kernel, topk=k + 1,
                          cast_bf16=use_bf16_matmul),
        out_shape=jax.ShapeDtypeStruct((n_pad, n_pad), jnp.float32),
        grid_spec=pltpu.PrefetchScalarGridSpec(
            num_scalar_prefetch=0,
            grid=(n_pad // tm,),
            in_specs=[
                pl.BlockSpec((tm, isize_pad), lambda i: (i, 0)),      # h rows
                pl.BlockSpec((isize_pad, n_pad), lambda i: (0, 0)),   # hT const
            ],
            out_specs=pl.BlockSpec((tm, n_pad), lambda i: (i, 0)),
        ),
        compiler_params=pltpu.CompilerParams(
            dimension_semantics=("parallel",),
            vmem_limit_bytes=vmem_limit,
        ),
    )(h, ht)

    if n_pad != n:
        sim = sim[:n, :n]
    return sim


def reference_forward(features, weights, k):
    """Pure-JAX reference mirroring the PyTorch module (dense branch)."""
    h = features.astype(jnp.float32)
    nlayers = weights.shape[0]
    for li in range(nlayers):
        h = h * weights[li][None, :]
        if li != nlayers - 1:
            h = jnp.where(h > 0, h, jnp.exp(h) - 1.0)
    norm = jnp.sqrt(jnp.sum(h * h, axis=1, keepdims=True))
    h = h / jnp.maximum(norm, 1e-12)
    s = h @ h.T
    vals, idx = jax.lax.top_k(s, k + 1)
    mask = jnp.zeros_like(s)
    mask = mask.at[jnp.arange(s.shape[0])[:, None], idx].set(1.0)
    return jnp.maximum(s * mask, 0.0)


if __name__ == "__main__":
    # Module hyper-params (small, consistent with ATT_learner.__init__).
    nlayers = 2
    isize = 32
    k = 4          # -> keep top k+1 = 5 per row
    N = 16         # number of nodes

    key = jax.random.PRNGKey(0)
    features = jax.random.normal(key, (N, isize), dtype=jnp.float32)

    # Attentive.__init__: self.w = nn.Parameter(torch.ones(isize))
    weights = jnp.ones((nlayers, isize), dtype=jnp.float32)

    out = att_learner_forward(features, weights, k)
    out = jax.block_until_ready(out)

    ref = reference_forward(features, weights, k)
    np.testing.assert_allclose(np.asarray(out), np.asarray(ref),
                               rtol=1e-5, atol=1e-5)

    print("KERNEL_OK")
</pallas_src>

<mosaic_0001>
module attributes {stable_mosaic.version = 11 : i64} {
  func.func @_embed_kernel(%arg0: i32, %arg1: memref<2x32xf32, #tpu.memory_space<vmem>>, %arg2: memref<128x32xf32, #tpu.memory_space<vmem>>, %arg3: memref<128x32xf32, #tpu.memory_space<vmem>>, %arg4: memref<32x128xf32, #tpu.memory_space<vmem>>) attributes {dimension_semantics = [#tpu.dimension_semantics<parallel>], iteration_bounds = array<i64: 1>, scalar_prefetch = 0 : i64, scratch_operands = 0 : i64, tpu.core_type = #tpu.core_type<tc>, window_params = [{pipeline_mode = #tpu.pipeline_mode<synchronous>, transform_indices = @transform_0, window_bounds = array<i64: 2, 32>}, {transform_indices = @transform_1, window_bounds = array<i64: 128, 32>}, {transform_indices = @transform_2, window_bounds = array<i64: 128, 32>}, {transform_indices = @transform_3, window_bounds = array<i64: 32, 128>}]} {
    %c0 = arith.constant 0 : index
    %c0_0 = arith.constant 0 : index
    %0 = vector.load %arg2[%c0, %c0_0] : memref<128x32xf32, #tpu.memory_space<vmem>>, vector<128x32xf32>
    %c0_1 = arith.constant 0 : index
    %c0_2 = arith.constant 0 : index
    %1 = vector.load %arg1[%c0_1, %c0_2] : memref<2x32xf32, #tpu.memory_space<vmem>>, vector<1x32xf32>
    %2 = vector.shape_cast %1 : vector<1x32xf32> to vector<32xf32>
    %3 = vector.shape_cast %2 : vector<32xf32> to vector<1x32xf32>
    %4 = vector.broadcast %3 : vector<1x32xf32> to vector<128x32xf32>
    %5 = arith.mulf %0, %4 : vector<128x32xf32>
    %cst = arith.constant 0.000000e+00 : f32
    %6 = vector.broadcast %cst : f32 to vector<128x32xf32>
    %7 = arith.cmpf ogt, %5, %6 : vector<128x32xf32>
    %8 = math.exp %5 : vector<128x32xf32>
    %cst_3 = arith.constant 1.000000e+00 : f32
    %9 = vector.broadcast %cst_3 : f32 to vector<128x32xf32>
    %10 = arith.subf %8, %9 : vector<128x32xf32>
    %11 = arith.select %7, %5, %10 : vector<128x32xi1>, vector<128x32xf32>
    %c1 = arith.constant 1 : index
    %c0_4 = arith.constant 0 : index
    %12 = vector.load %arg1[%c1, %c0_4] : memref<2x32xf32, #tpu.memory_space<vmem>>, vector<1x32xf32>
    %13 = vector.shape_cast %12 : vector<1x32xf32> to vector<32xf32>
    %14 = vector.shape_cast %13 : vector<32xf32> to vector<1x32xf32>
    %15 = vector.broadcast %14 : vector<1x32xf32> to vector<128x32xf32>
    %16 = arith.mulf %11, %15 : vector<128x32xf32>
    %17 = arith.mulf %16, %16 : vector<128x32xf32>
    %cst_5 = arith.constant dense<0.000000e+00> : vector<128xf32>
    %18 = vector.multi_reduction <add>, %17, %cst_5 [1] : vector<128x32xf32> to vector<128xf32>
    %19 = vector.shape_cast %18 : vector<128xf32> to vector<128x1xf32>
    %20 = math.sqrt %19 : vector<128x1xf32>
    %cst_6 = arith.constant 9.99999996E-13 : f32
    %21 = vector.broadcast %cst_6 : f32 to vector<128x1xf32>
    %22 = arith.maximumf %20, %21 : vector<128x1xf32>
    %23 = vector.broadcast %22 : vector<128x1xf32> to vector<128x32xf32>
    %24 = arith.divf %16, %23 : vector<128x32xf32>
    %c0_7 = arith.constant 0 : index
    %c0_8 = arith.constant 0 : index
    %25 = vector.load %arg3[%c0_7, %c0_8] : memref<128x32xf32, #tpu.memory_space<vmem>>, vector<128x32xf32>
    tpu.vector_store %arg3[%c0_7, %c0_8], %24 {strides = array<i32>} : memref<128x32xf32, #tpu.memory_space<vmem>>, vector<128x32xf32>,
    %26 = tpu.transpose %24, [1, 0] : vector<128x32xf32> -> vector<32x128xf32>
    %c0_9 = arith.constant 0 : index
    %c0_10 = arith.constant 0 : index
    %27 = vector.load %arg4[%c0_9, %c0_10] : memref<32x128xf32, #tpu.memory_space<vmem>>, vector<32x128xf32>
    tpu.vector_store %arg4[%c0_9, %c0_10], %26 {strides = array<i32>} : memref<32x128xf32, #tpu.memory_space<vmem>>, vector<32x128xf32>,
    return
  }
  func.func @transform_0(%arg0: i32) -> (i32, i32) {
    %c0_i32 = arith.constant 0 : i32
    %c0_i32_0 = arith.constant 0 : i32
    %c0_i32_1 = arith.constant 0 : i32
    return %c0_i32, %c0_i32_0 : i32, i32
  }
  func.func @transform_1(%arg0: i32) -> (i32, i32) {
    %c0_i32 = arith.constant 0 : i32
    %c0_i32_0 = arith.constant 0 : i32
    return %arg0, %c0_i32 : i32, i32
  }
  func.func @transform_2(%arg0: i32) -> (i32, i32) {
    %c0_i32 = arith.constant 0 : i32
    %c0_i32_0 = arith.constant 0 : i32
    return %arg0, %c0_i32 : i32, i32
  }
  func.func @transform_3(%arg0: i32) -> (i32, i32) {
    %c0_i32 = arith.constant 0 : i32
    %c0_i32_0 = arith.constant 0 : i32
    return %c0_i32, %arg0 : i32, i32
  }
}

</mosaic_0001>

<bundles_post_ra>
// kernel: tpu_custom_call.1
= control target key start
LH: loop header
LB: loop body
LE: loop exit
PB: predicated region body
PF: predicated region fallthrough
CT: control target
= control target key end

     0   :  { %s1092_s0 = inlined_call_operand.vmem [shape: f32[2,32], index: 0, kind: input, shape index: {}]   ;;  %s1093_s1 = inlined_call_operand.vmem [shape: f32[128,32], index: 1, kind: input, shape index: {}]   ;;  %s1094_s2 = inlined_call_operand.vmem [shape: f32[128,32], index: 2, kind: output, shape index: {0}]   ;;  %s1095_s3 = inlined_call_operand.hbm [shape: f32[32,128], index: 3, kind: output, shape index: {1}]  }
   0x1   :  { %v16_v0 = vld [vmem:[%s1093_s1 + $0x10] sm:$0xff]  ;;  %v449_v1 = vld [vmem:[%s1092_s0] ss:$0 sm:$0xff]  ;;  %v17_v4 = vld [vmem:[%s1093_s1 + $0x18] sm:$0xff] }
   0x2   :  { %v617_v2 = vmul.f32 %v449_v1, %v16_v0  ;;  %v14_v3 = vld [vmem:[%s1093_s1] sm:$0xff]  ;;  %v15_v5 = vld [vmem:[%s1093_s1 + $0x8] sm:$0xff]  ;;  %v630_v7 = vmul.f32 %v449_v1, %v17_v4  ;;  %v21_v14 = vld [vmem:[%s1093_s1 + $0x38] sm:$0xff] }
   0x3   :  { %v628_v6 = vmul.f32 %v449_v1, %v14_v3  ;;  %v632_v8 = vmul.f32 %v449_v1, %v15_v5  ;;  %v19_v9 = vld [vmem:[%s1093_s1 + $0x28] sm:$0xff]  ;;  %v18_v10 = vld [vmem:[%s1093_s1 + $0x20] sm:$0xff]  ;;  %v20_v17 = vld [vmem:[%s1093_s1 + $0x30] sm:$0xff]  ;;  %v668_v25 = vmul.f32 %v449_v1, %v21_v14 }
   0x4   :  { %v71_v11 = vmul.f32 1.442695, %v617_v2  ;;  %v641_v12 = vmul.f32 %v449_v1, %v19_v9  ;;  %v643_v13 = vmul.f32 %v449_v1, %v18_v10  ;;  %v73_v16 = vmul.f32 1.442695, %v630_v7  ;;  %v22_v18 = vld [vmem:[%s1093_s1 + $0x40] sm:$0xff]  ;;  %v23_v20 = vld [vmem:[%s1093_s1 + $0x48] sm:$0xff] }
   0x5   :  { %v67_v15 = vmul.f32 1.442695, %v628_v6  ;;  %v69_v19 = vmul.f32 1.442695, %v632_v8  ;;  %v24_v21 = vld [vmem:[%s1093_s1 + $0x50] sm:$0xff]  ;;  %v25_v22 = vld [vmem:[%s1093_s1 + $0x58] sm:$0xff]  ;;  %v670_v26 = vmul.f32 %v449_v1, %v20_v17  ;;  %v672_v27 = vmul.f32 %v449_v1, %v22_v18 }
   0x6   :  { %470 = vpow2.f32 %v71_v11  ;;  %v77_v23 = vmul.f32 1.442695, %v641_v12  ;;  %v75_v24 = vmul.f32 1.442695, %v643_v13  ;;  %v674_v28 = vmul.f32 %v449_v1, %v23_v20 }
   0x7   :  { %472 = vpow2.f32 %v67_v15  ;;  %v676_v29 = vmul.f32 %v449_v1, %v24_v21  ;;  %v678_v30 = vmul.f32 %v449_v1, %v25_v22 }
   0x8   :  { %474 = vpow2.f32 %v73_v16 }
   0x9   :  { %476 = vpow2.f32 %v69_v19 }
   0xa   :  { %9 = vsyncpa [#allocation3], 0  ;;  %478 = vpow2.f32 %v77_v23  ;;  %v81_v31 = vmul.f32 1.442695, %v668_v25  ;;  %v79_v32 = vmul.f32 1.442695, %v670_v26 }
   0xb   :  { %480 = vpow2.f32 %v75_v24  ;;  %v83_v33 = vmul.f32 1.442695, %v672_v27  ;;  %v26_v34 = vld [vmem:[%s1093_s1 + $0x60] sm:$0xff]  ;;  %v27_v35 = vld [vmem:[%s1093_s1 + $0x68] sm:$0xff]  ;;  %v85_v36 = vmul.f32 1.442695, %v674_v28 }
   0xc   :  { %482 = vpow2.f32 %v81_v31  ;;  %v28_v37 = vld [vmem:[%s1093_s1 + $0x70] sm:$0xff]  ;;  %v29_v38 = vld [vmem:[%s1093_s1 + $0x78] sm:$0xff]  ;;  %v87_v39 = vmul.f32 1.442695, %v676_v29  ;;  %v89_v40 = vmul.f32 1.442695, %v678_v30  ;;  %v698_v41 = vmul.f32 %v449_v1, %v26_v34 }
   0xd   :  { %484 = vpow2.f32 %v79_v32  ;;  %v700_v42 = vmul.f32 %v449_v1, %v27_v35  ;;  %v702_v43 = vmul.f32 %v449_v1, %v28_v37  ;;  %v704_v44 = vmul.f32 %v449_v1, %v29_v38  ;;  %v715_v52 = vld [vmem:[%s1092_s0 + $0x1] ss:$0 sm:$0xff]  ;;  %s588_s22 = smov [#allocation2]  }
   0xe   :  { %486 = vpow2.f32 %v83_v33  ;;  %v91_v45 = vmul.f32 1.442695, %v698_v41  ;;  %vm168_vm0 = vcmask 261120   ;;  %vm53_vm1 = vcmp.gt.f32.partialorder %v617_v2, 0.0  ;;  %s436_s23 = sshll.u32 %s588_s22, 4  ;;  %s437_s23 = int_to_ptr.vmem [resolvable:$true] %s436_s23 }
   0xf   :  { %488 = vpow2.f32 %v85_v36  ;;  %v93_v46 = vmul.f32 1.442695, %v700_v42  ;;  %v97_v47 = vmul.f32 1.442695, %v704_v44  ;;  %vm51_vm2 = vcmp.gt.f32.partialorder %v628_v6, 0.0  ;;  %s566_s24 = scalar_lea.vmem %s437_s23, 512  ;;  %p571_p1 = scmp.lt.s32.totalorder %s437_s23, %s437_s23 }
  0x10   :  { %490 = vpow2.f32 %v87_v39  ;;  %v95_v49 = vmul.f32 1.442695, %v702_v43  ;;  %vm54_vm3 = vcmp.gt.f32.partialorder %v630_v7, 0.0  ;;  %vm52_vm4 = vcmp.gt.f32.partialorder %v632_v8, 0.0  ;;  %p567_p0 = scmp.ne.s32.totalorder %s437_s23, %s566_s24  ;;  %p572_p2 = scmp.lt.s32.totalorder %s566_s24, %s566_s24 }
  0x11   :  { %492 = vpow2.f32 %v89_v40  ;;  %vm56_vm5 = vcmp.gt.f32.partialorder %v641_v12, 0.0  ;;  %vm55_vm6 = vcmp.gt.f32.partialorder %v643_v13, 0.0  ;;  %vm58_vm7 = vcmp.gt.f32.partialorder %v668_v25, 0.0 }
  0x12   :  { %494 = vpow2.f32 %v91_v45  ;;  %vm57_vm8 = vcmp.gt.f32.partialorder %v670_v26, 0.0  ;;  %vm59_vm9 = vcmp.gt.f32.partialorder %v672_v27, 0.0  ;;  %vm60_vm10 = vcmp.gt.f32.partialorder %v674_v28, 0.0  ;;  %p573_p3 = por %p572_p2, %p571_p1 }
  0x13   :  { %v471_v48 = vpop.eup %470  ;;  %496 = vpow2.f32 %v93_v46  ;;  %vm61_vm11 = vcmp.gt.f32.partialorder %v676_v29, 0.0  ;;  %vm62_vm12 = vcmp.gt.f32.partialorder %v678_v30, 0.0  ;;  %vm64_vm13 = vcmp.gt.f32.partialorder %v700_v42, 0.0 }
  0x14   :  { %v473_v50 = vpop.eup %472  ;;  %v452_v51 = vadd.f32 -1.0, %v471_v48  ;;  %498 = vpow2.f32 %v97_v47  ;;  %vm63_vm14 = vcmp.gt.f32.partialorder %v698_v41, 0.0  ;;  %vm66_vm15 = vcmp.gt.f32.partialorder %v704_v44, 0.0  ;;  %p574_p4 = pnand %p573_p3, %p567_p0 }
  0x15   :  { %v475_v53 = vpop.eup %474  ;;  %v450_v54 = vadd.f32 -1.0, %v473_v50  ;;  %500 = vpow2.f32 %v95_v49 }
  0x16   :  { %v477_v55 = vpop.eup %476  ;;  %v117_v56 = vsel %vm53_vm1, %v617_v2, %v452_v51  ;;  %v453_v57 = vadd.f32 -1.0, %v475_v53  ;;  %vm65_vm1 = vcmp.gt.f32.partialorder %v702_v43, 0.0 }
  0x17   :  { %v479_v58 = vpop.eup %478  ;;  %v728_v59 = vmul.f32 %v715_v52, %v117_v56  ;;  %v115_v60 = vsel %vm51_vm2, %v628_v6, %v450_v54  ;;  %v451_v61 = vadd.f32 -1.0, %v477_v55 }
  0x18   :  { %v481_v62 = vpop.eup %480  ;;  %v734_v63 = vmul.f32 %v715_v52, %v115_v60  ;;  %v118_v0 = vsel %vm54_vm3, %v630_v7, %v453_v57  ;;  %v455_v1 = vadd.f32 -1.0, %v479_v58 }
  0x19   :  { %v483_v2 = vpop.eup %482  ;;  %v154_v3 = vmul.f32 %v728_v59, %v728_v59  ;;  %v743_v4 = vmul.f32 %v715_v52, %v118_v0  ;;  %v116_v5 = vsel %vm52_vm4, %v632_v8, %v451_v61  ;;  %v454_v6 = vadd.f32 -1.0, %v481_v62 }
  0x1a   :  { %v485_v9 = vpop.eup %484  ;;  %v152_v10 = vmul.f32 %v734_v63, %v734_v63  ;;  %v751_v7 = vmul.f32 %v715_v52, %v116_v5  ;;  %v120_v11 = vsel %vm56_vm5, %v641_v12, %v455_v1  ;;  %v457_v14 = vadd.f32 -1.0, %v483_v2 }
  0x1b   :  { %v487_v15 = vpop.eup %486  ;;  %v175_v16 = vsel %vm168_vm0, %v154_v3, 0.0  ;;  %v155_v17 = vmul.f32 %v743_v4, %v743_v4  ;;  %v760_v8 = vmul.f32 %v715_v52, %v120_v11  ;;  %v119_v18 = vsel %vm55_vm6, %v643_v13, %v454_v6 }
  0x1c   :  { %v489_v19 = vpop.eup %488  ;;  %176 = vadd.xlane.f32.xlu1 %v175_v16  ;;  %v169_v20 = vsel %vm168_vm0, %v152_v10, 0.0  ;;  %v153_v12 = vmul.f32 %v751_v7, %v751_v7  ;;  %v769_v21 = vmul.f32 %v715_v52, %v119_v18  ;;  %v122_v22 = vsel %vm58_vm7, %v668_v25, %v457_v14 }
  0x1d   :  { %v491_v23 = vpop.eup %490  ;;  %170 = vadd.xlane.f32.xlu0 %v169_v20  ;;  %v178_v24 = vsel %vm168_vm0, %v155_v17, 0.0  ;;  %v157_v13 = vmul.f32 %v760_v8, %v760_v8  ;;  %v778_v31 = vmul.f32 %v715_v52, %v122_v22  ;;  %v456_v32 = vadd.f32 -1.0, %v485_v9 }
  0x1e   :  { %v493_v33 = vpop.eup %492  ;;  %v172_v34 = vsel %vm168_vm0, %v153_v12, 0.0  ;;  %v156_v35 = vmul.f32 %v769_v21, %v769_v21  ;;  %v458_v36 = vadd.f32 -1.0, %v487_v15  ;;  %v459_v37 = vadd.f32 -1.0, %v489_v19 }
  0x1f   :  { %v495_v25 = vpop.eup %494  ;;  %v121_v38 = vsel %vm57_vm8, %v670_v26, %v456_v32  ;;  %v460_v39 = vadd.f32 -1.0, %v491_v23  ;;  %v184_v26 = vsel %vm168_vm0, %v157_v13, 0.0  ;;  %v159_v49 = vmul.f32 %v778_v31, %v778_v31 }
  0x20   :  { %v497_v40 = vpop.eup %496  ;;  %179 = vadd.xlane.f32.xlu1 %v178_v24  ;;  %v788_v45 = vmul.f32 %v715_v52, %v121_v38  ;;  %v123_v46 = vsel %vm59_vm9, %v672_v27, %v458_v36  ;;  %v124_v47 = vsel %vm60_vm10, %v674_v28, %v459_v37  ;;  %v181_v48 = vsel %vm168_vm0, %v156_v35, 0.0 }
  0x21   :  { %173 = vadd.xlane.f32.xlu0 %v172_v34  ;;  %v802_v50 = vmul.f32 %v715_v52, %v124_v47  ;;  %v807_v51 = vmul.f32 %v715_v52, %v123_v46  ;;  %v125_v28 = vsel %vm61_vm11, %v676_v29, %v460_v39  ;;  %v461_v53 = vadd.f32 -1.0, %v493_v33  ;;  %v499_v54 = vpop.eup %498 }
  0x22   :  { %v158_v27 = vmul.f32 %v788_v45, %v788_v45  ;;  %v462_v55 = vadd.f32 -1.0, %v495_v25  ;;  %v463_v56 = vadd.f32 -1.0, %v497_v40  ;;  %v501_v57 = vpop.eup %500  ;;  %v190_v60 = vsel %vm168_vm0, %v159_v49, 0.0 }
  0x23   :  { %v126_v58 = vsel %vm62_vm12, %v678_v30, %v461_v53  ;;  %v161_v29 = vmul.f32 %v802_v50, %v802_v50  ;;  %v819_v61 = vmul.f32 %v715_v52, %v125_v28  ;;  %v160_v1 = vmul.f32 %v807_v51, %v807_v51 }
  0x24   :  { %185 = vadd.xlane.f32.xlu1 %v184_v26  ;;  %v822_v62 = vmul.f32 %v715_v52, %v126_v58  ;;  %v187_v0 = vsel %vm168_vm0, %v158_v27, 0.0  ;;  %v128_v30 = vsel %vm64_vm13, %v700_v42, %v463_v56  ;;  %v465_v2 = vadd.f32 -1.0, %v499_v54 }
  0x25   :  { %182 = vadd.xlane.f32.xlu0 %v181_v48  ;;  %v127_v3 = vsel %vm63_vm14, %v698_v41, %v462_v55  ;;  %v464_v5 = vadd.f32 -1.0, %v501_v57  ;;  %v196_v6 = vsel %vm168_vm0, %v161_v29, 0.0  ;;  %v835_v10 = vmul.f32 %v715_v52, %v128_v30 }
  0x26   :  { %v163_v9 = vmul.f32 %v822_v62, %v822_v62  ;;  %v193_v42 = vsel %vm168_vm0, %v160_v1, 0.0  ;;  %v162_v41 = vmul.f32 %v819_v61, %v819_v61  ;;  %v841_v11 = vmul.f32 %v715_v52, %v127_v3 }
  0x27   :  { %v130_v14 = vsel %vm66_vm15, %v704_v44, %v465_v2  ;;  %v129_v15 = vsel %vm65_vm1, %v702_v43, %v464_v5  ;;  %v165_v17 = vmul.f32 %v835_v10, %v835_v10 }
  0x28   :  { %191 = vadd.xlane.f32.xlu1 %v190_v60  ;;  %v202_v16 = vsel %vm168_vm0, %v163_v9, 0.0  ;;  %v849_v18 = vmul.f32 %v715_v52, %v130_v14  ;;  %v199_v19 = vsel %vm168_vm0, %v162_v41, 0.0  ;;  %v164_v20 = vmul.f32 %v841_v11, %v841_v11 }
  0x29   :  { %188 = vadd.xlane.f32.xlu0 %v187_v0  ;;  %v855_v12 = vmul.f32 %v715_v52, %v129_v15  ;;  %v208_v43 = vsel %vm168_vm0, %v165_v17, 0.0 }
  0x2a   :  { %v167_v44 = vmul.f32 %v849_v18, %v849_v18  ;;  %v205_v22 = vsel %vm168_vm0, %v164_v20, 0.0 }
  0x2b   :  { %v166_v23 = vmul.f32 %v855_v12, %v855_v12 }
  0x2c   :  { %197 = vadd.xlane.f32.xlu1 %v196_v6  ;;  %v214_v24 = vsel %vm168_vm0, %v167_v44, 0.0 }
  0x2d   :  { %194 = vadd.xlane.f32.xlu0 %v193_v42  ;;  %v211_v13 = vsel %vm168_vm0, %v166_v23, 0.0 }
  0x30   :  { %203 = vadd.xlane.f32.xlu1 %v202_v16 }
  0x31   :  { %200 = vadd.xlane.f32.xlu0 %v199_v19 }
  0x34   :  { %209 = vadd.xlane.f32.xlu1 %v208_v43 }
  0x35   :  { %206 = vadd.xlane.f32.xlu0 %v205_v22 }
  0x38   :  { %215 = vadd.xlane.f32.xlu1 %v214_v24 }
  0x39   :  { %212 = vadd.xlane.f32.xlu0 %v211_v13 }
  0xa5   :  { %v177_v52 = vpop.xlane.xlu1 %176 }
  0xa6   :  { %502 = vrsqrt.f32 %v177_v52  ;;  %v171_v32 = vpop.xlane.xlu0 %170  ;;  %vm233_vm2 = vcmp.eq.f32.partialorder %v177_v52, inf  ;;  %vm235_vm3 = vcmp.eq.f32.partialorder %v177_v52, 0.0  ;;  %v236_v39 = vand.u32 2147483648, %v177_v52 }
  0xa7   :  { %504 = vrsqrt.f32 %v171_v32  ;;  %vm219_vm4 = vcmp.eq.f32.partialorder %v171_v32, inf  ;;  %vm221_vm5 = vcmp.eq.f32.partialorder %v171_v32, 0.0  ;;  %v222_v47 = vand.u32 2147483648, %v171_v32 }
  0xa9   :  { %v180_v33 = vpop.xlane.xlu1 %179 }
  0xaa   :  { %506 = vrsqrt.f32 %v180_v33  ;;  %v174_v34 = vpop.xlane.xlu0 %173  ;;  %vm240_vm6 = vcmp.eq.f32.partialorder %v180_v33, inf  ;;  %vm242_vm7 = vcmp.eq.f32.partialorder %v180_v33, 0.0  ;;  %v243_v48 = vand.u32 2147483648, %v180_v33 }
  0xab   :  { %508 = vrsqrt.f32 %v174_v34  ;;  %vm226_vm8 = vcmp.eq.f32.partialorder %v174_v34, inf  ;;  %vm228_vm9 = vcmp.eq.f32.partialorder %v174_v34, 0.0  ;;  %v229_v28 = vand.u32 2147483648, %v174_v34 }
  0xad   :  { %v865_v35 = vpop.xlane.xlu1 %185 }
  0xae   :  { %510 = vrsqrt.f32 %v865_v35  ;;  %v868_v36 = vpop.xlane.xlu0 %182  ;;  %vm254_vm10 = vcmp.eq.f32.partialorder %v865_v35, inf  ;;  %vm256_vm11 = vcmp.eq.f32.partialorder %v865_v35, 0.0  ;;  %v257_v0 = vand.u32 2147483648, %v865_v35 }
  0xaf   :  { %512 = vrsqrt.f32 %v868_v36  ;;  %vm247_vm12 = vcmp.eq.f32.partialorder %v868_v36, inf  ;;  %vm249_vm13 = vcmp.eq.f32.partialorder %v868_v36, 0.0  ;;  %v250_v3 = vand.u32 2147483648, %v868_v36 }
  0xb1   :  { %v871_v37 = vpop.xlane.xlu1 %191 }
  0xb2   :  { %514 = vrsqrt.f32 %v871_v37  ;;  %v874_v25 = vpop.xlane.xlu0 %188  ;;  %vm268_vm14 = vcmp.eq.f32.partialorder %v871_v37, inf  ;;  %vm270_vm15 = vcmp.eq.f32.partialorder %v871_v37, 0.0  ;;  %v271_v20 = vand.u32 2147483648, %v871_v37 }
  0xb3   :  { %v503_v38 = vpop.eup %502  ;;  %516 = vrsqrt.f32 %v874_v25  ;;  %vm261_vm1 = vcmp.eq.f32.partialorder %v874_v25, inf  ;;  %v264_v22 = vand.u32 2147483648, %v874_v25 }
  0xb4   :  { %v505_v40 = vpop.eup %504  ;;  %v232_v46 = vmul.f32 %v503_v38, %v177_v52 }
  0xb5   :  { %v218_v26 = vmul.f32 %v505_v40, %v171_v32  ;;  %v877_v49 = vpop.xlane.xlu1 %197 }
  0xb6   :  { %v234_v27 = vsel %vm233_vm2, %v177_v52, %v232_v46  ;;  %v881_v53 = vpop.xlane.xlu0 %194  ;;  %518 = vrsqrt.f32 %v877_v49  ;;  %vm263_vm2 = vcmp.eq.f32.partialorder %v874_v25, 0.0 }
  0xb7   :  { %v507_v54 = vpop.eup %506  ;;  %v237_v55 = vsel %vm235_vm3, %v236_v39, %v234_v27  ;;  %v220_v56 = vsel %vm219_vm4, %v171_v32, %v218_v26  ;;  %520 = vrsqrt.f32 %v881_v53  ;;  %vm282_vm3 = vcmp.eq.f32.partialorder %v877_v49, inf }
  0xb8   :  { %v509_v57 = vpop.eup %508  ;;  %v331_v58 = vmax.f32 %v237_v55, 1e-12  ;;  %v223_v60 = vsel %vm221_vm5, %v222_v47, %v220_v56  ;;  %v239_v29 = vmul.f32 %v507_v54, %v180_v33  ;;  %vm284_vm4 = vcmp.eq.f32.partialorder %v877_v49, 0.0 }
  0xb9   :  { %v329_v1 = vmax.f32 %v223_v60, 1e-12  ;;  %v225_v30 = vmul.f32 %v509_v57, %v174_v34  ;;  %v906_v43 = vpop.xlane.xlu1 %203  ;;  %vm275_vm5 = vcmp.eq.f32.partialorder %v881_v53, inf }
  0xba   :  { %522 = vrcp.f32 %v331_v58  ;;  %v241_v2 = vsel %vm240_vm6, %v180_v33, %v239_v29  ;;  %v895_v5 = vpop.xlane.xlu0 %200  ;;  %vm277_vm6 = vcmp.eq.f32.partialorder %v881_v53, 0.0 }
  0xbb   :  { %v511_v6 = vpop.eup %510  ;;  %524 = vrcp.f32 %v329_v1  ;;  %v244_v9 = vsel %vm242_vm7, %v243_v48, %v241_v2  ;;  %v227_v42 = vsel %vm226_vm8, %v174_v34, %v225_v30  ;;  %vm289_vm7 = vcmp.eq.f32.partialorder %v895_v5, inf }
  0xbc   :  { %v513_v41 = vpop.eup %512  ;;  %v332_v14 = vmax.f32 %v244_v9, 1e-12  ;;  %v230_v15 = vsel %vm228_vm9, %v229_v28, %v227_v42  ;;  %v253_v16 = vmul.f32 %v511_v6, %v865_v35  ;;  %526 = vrsqrt.f32 %v895_v5 }
  0xbd   :  { %v330_v17 = vmax.f32 %v230_v15, 1e-12  ;;  %v246_v19 = vmul.f32 %v513_v41, %v868_v36  ;;  %v285_v28 = vand.u32 2147483648, %v877_v49  ;;  %v292_v42 = vand.u32 2147483648, %v895_v5 }
  0xbe   :  { %528 = vrcp.f32 %v332_v14  ;;  %v255_v44 = vsel %vm254_vm10, %v865_v35, %v253_v16  ;;  %v913_v23 = vpop.xlane.xlu0 %206  ;;  %v928_v35 = vpop.xlane.xlu1 %209  ;;  %vm291_vm8 = vcmp.eq.f32.partialorder %v895_v5, 0.0  ;;  %vm296_vm9 = vcmp.eq.f32.partialorder %v906_v43, inf }
  0xbf   :  { %v515_v24 = vpop.eup %514  ;;  %530 = vrcp.f32 %v330_v17  ;;  %v258_v13 = vsel %vm256_vm11, %v257_v0, %v255_v44  ;;  %v248_v52 = vsel %vm247_vm12, %v868_v36, %v246_v19  ;;  %v278_v36 = vand.u32 2147483648, %v881_v53 }
  0xc0   :  { %v517_v32 = vpop.eup %516  ;;  %v334_v33 = vmax.f32 %v258_v13, 1e-12  ;;  %v251_v34 = vsel %vm249_vm13, %v250_v3, %v248_v52  ;;  %v267_v38 = vmul.f32 %v515_v24, %v871_v37  ;;  %532 = vrsqrt.f32 %v906_v43 }
  0xc1   :  { %v333_v39 = vmax.f32 %v251_v34, 1e-12  ;;  %v260_v40 = vmul.f32 %v517_v32, %v874_v25  ;;  %534 = vrsqrt.f32 %v913_v23  ;;  %vm298_vm10 = vcmp.eq.f32.partialorder %v906_v43, 0.0 }
  0xc2   :  { %536 = vrcp.f32 %v334_v33  ;;  %v269_v46 = vsel %vm268_vm14, %v871_v37, %v267_v38  ;;  %v935_v47 = vpop.xlane.xlu0 %212  ;;  %v950_v37 = vpop.xlane.xlu1 %215  ;;  %v299_v19 = vand.u32 2147483648, %v906_v43  ;;  %vm303_vm11 = vcmp.eq.f32.partialorder %v913_v23, inf }
  0xc3   :  { %v519_v26 = vpop.eup %518  ;;  %538 = vrcp.f32 %v333_v39  ;;  %v272_v48 = vsel %vm270_vm15, %v271_v20, %v269_v46  ;;  %v262_v27 = vsel %vm261_vm1, %v874_v25, %v260_v40  ;;  %vm305_vm12 = vcmp.eq.f32.partialorder %v913_v23, 0.0 }
  0xc4   :  { %v521_v54 = vpop.eup %520  ;;  %v336_v55 = vmax.f32 %v272_v48, 1e-12  ;;  %v265_v56 = vsel %vm263_vm2, %v264_v22, %v262_v27  ;;  %v281_v57 = vmul.f32 %v519_v26, %v877_v49  ;;  %540 = vrsqrt.f32 %v928_v35 }
  0xc5   :  { %v335_v58 = vmax.f32 %v265_v56, 1e-12  ;;  %v274_v60 = vmul.f32 %v521_v54, %v881_v53  ;;  %542 = vrsqrt.f32 %v935_v47  ;;  %vm310_vm13 = vcmp.eq.f32.partialorder %v928_v35, inf }
  0xc6   :  { %544 = vrcp.f32 %v336_v55  ;;  %v283_v29 = vsel %vm282_vm3, %v877_v49, %v281_v57  ;;  %vm312_vm14 = vcmp.eq.f32.partialorder %v928_v35, 0.0  ;;  %v313_v32 = vand.u32 2147483648, %v928_v35 }
  0xc7   :  { %v523_v25 = vpop.eup %522  ;;  %546 = vrcp.f32 %v335_v58  ;;  %v276_v0 = vsel %vm275_vm5, %v881_v53, %v274_v60  ;;  %v286_v1 = vsel %vm284_vm4, %v285_v28, %v283_v29  ;;  %vm317_vm15 = vcmp.eq.f32.partialorder %v935_v47, inf }
  0xc8   :  { %v525_v30 = vpop.eup %524  ;;  %v279_v2 = vsel %vm277_vm6, %v278_v36, %v276_v0  ;;  %v338_v3 = vmax.f32 %v286_v1, 1e-12  ;;  %548 = vrsqrt.f32 %v950_v37  ;;  %v350_v14 = vmul.f32 %v523_v25, %v728_v59 }
  0xc9   :  { %v527_v6 = vpop.eup %526  ;;  %v337_v9 = vmax.f32 %v279_v2, 1e-12  ;;  %v346_v41 = vmul.f32 %v525_v30, %v734_v63  ;;  %vm319_vm1 = vcmp.eq.f32.partialorder %v935_v47, 0.0  ;;  %vm324_vm2 = vcmp.eq.f32.partialorder %v950_v37, inf }
  0xca   :  { %550 = vrcp.f32 %v338_v3  ;;  %v288_v53 = vmul.f32 %v527_v6, %v895_v5  ;;  %379 = vst.msk [vmem:[%s1094_s2 + $0x10] sm:$0xff] %vm168_vm0, %v350_v14  ;;  %v327_v54 = vand.u32 2147483648, %v950_v37  ;;  %vm326_vm3 = vcmp.eq.f32.partialorder %v950_v37, 0.0 }
  0xcb   :  { %v529_v49 = vpop.eup %528  ;;  %552 = vrcp.f32 %v337_v9  ;;  %393 = vxpose.xlu0.b32.start [1/16] (narrow) %v346_v41, 32  ;;  %377 = vst.msk [vmem:[%s1094_s2] sm:$0xff] %vm168_vm0, %v346_v41 }
  0xcc   :  { %v531_v63 = vpop.eup %530  ;;  %v290_v59 = vsel %vm289_vm7, %v895_v5, %v288_v53  ;;  %v352_v15 = vmul.f32 %v529_v49, %v743_v4  ;;  %v306_v5 = vand.u32 2147483648, %v913_v23 }
  0xcd   :  { %v533_v16 = vpop.eup %532  ;;  %v293_v17 = vsel %vm291_vm8, %v292_v42, %v290_v59  ;;  %v348_v20 = vmul.f32 %v531_v63, %v751_v7 }
  0xce   :  { %v535_v44 = vpop.eup %534  ;;  %v339_v22 = vmax.f32 %v293_v17, 1e-12  ;;  %v295_v24 = vmul.f32 %v533_v16, %v906_v43  ;;  %380 = vst.msk [vmem:[%s1094_s2 + $0x18] sm:$0xff] %vm168_vm0, %v352_v15 }
  0xcf   :  { %v537_v4 = vpop.eup %536  ;;  %v302_v13 = vmul.f32 %v535_v44, %v913_v23  ;;  %394 = vxpose.xlu0.b32.cont [2/16] (narrow) %v348_v20, 32  ;;  %378 = vst.msk [vmem:[%s1094_s2 + $0x8] sm:$0xff] %vm168_vm0, %v348_v20 }
  0xd0   :  { %v539_v7 = vpop.eup %538  ;;  %554 = vrcp.f32 %v339_v22  ;;  %v297_v52 = vsel %vm296_vm9, %v906_v43, %v295_v24  ;;  %v356_v33 = vmul.f32 %v537_v4, %v760_v8  ;;  %v320_v8 = vand.u32 2147483648, %v935_v47 }
  0xd1   :  { %v541_v34 = vpop.eup %540  ;;  %v300_v38 = vsel %vm298_vm10, %v299_v19, %v297_v52  ;;  %v304_v39 = vsel %vm303_vm11, %v913_v23, %v302_v13  ;;  %v354_v40 = vmul.f32 %v539_v7, %v769_v21 }
  0xd2   :  { %v543_v46 = vpop.eup %542  ;;  %v340_v36 = vmax.f32 %v300_v38, 1e-12  ;;  %v307_v26 = vsel %vm305_vm12, %v306_v5, %v304_v39  ;;  %v309_v48 = vmul.f32 %v541_v34, %v928_v35  ;;  %382 = vst.msk [vmem:[%s1094_s2 + $0x28] sm:$0xff] %vm168_vm0, %v356_v33 }
  0xd3   :  { %v545_v43 = vpop.eup %544  ;;  %v341_v27 = vmax.f32 %v307_v26, 1e-12  ;;  %v316_v28 = vmul.f32 %v543_v46, %v935_v47  ;;  %395 = vxpose.xlu0.b32.cont [3/16] (narrow) %v350_v14, 32  ;;  %381 = vst.msk [vmem:[%s1094_s2 + $0x20] sm:$0xff] %vm168_vm0, %v354_v40 }
  0xd4   :  { %v547_v21 = vpop.eup %546  ;;  %556 = vrcp.f32 %v340_v36  ;;  %v311_v23 = vsel %vm310_vm13, %v928_v35, %v309_v48  ;;  %v360_v55 = vmul.f32 %v545_v43, %v778_v31 }
  0xd5   :  { %v549_v56 = vpop.eup %548  ;;  %558 = vrcp.f32 %v341_v27  ;;  %v314_v57 = vsel %vm312_vm14, %v313_v32, %v311_v23  ;;  %v318_v58 = vsel %vm317_vm15, %v935_v47, %v316_v28  ;;  %v358_v60 = vmul.f32 %v547_v21, %v788_v45 }
  0xd6   :  { %v342_v29 = vmax.f32 %v314_v57, 1e-12  ;;  %v321_v25 = vsel %vm319_vm1, %v320_v8, %v318_v58  ;;  %v323_v0 = vmul.f32 %v549_v56, %v950_v37  ;;  %384 = vst.msk [vmem:[%s1094_s2 + $0x38] sm:$0xff] %vm168_vm0, %v360_v55 }
  0xd7   :  { %v551_v31 = vpop.eup %550  ;;  %v343_v35 = vmax.f32 %v321_v25, 1e-12  ;;  %396 = vxpose.xlu0.b32.cont [4/16] (narrow) %v352_v15, 32  ;;  %383 = vst.msk [vmem:[%s1094_s2 + $0x30] sm:$0xff] %vm168_vm0, %v358_v60 }
  0xd8   :  { %v553_v45 = vpop.eup %552  ;;  %560 = vrcp.f32 %v342_v29  ;;  %v325_v47 = vsel %vm324_vm2, %v950_v37, %v323_v0  ;;  %v364_v1 = vmul.f32 %v551_v31, %v802_v50 }
  0xd9   :  { %562 = vrcp.f32 %v343_v35  ;;  %v328_v30 = vsel %vm326_vm3, %v327_v54, %v325_v47  ;;  %v362_v2 = vmul.f32 %v553_v45, %v807_v51 }
  0xda   :  { %v344_v3 = vmax.f32 %v328_v30, 1e-12  ;;  %386 = vst.msk [vmem:[%s1094_s2 + $0x48] sm:$0xff] %vm168_vm0, %v364_v1 }
  0xdb   :  { %397 = vxpose.xlu0.b32.cont [5/16] (narrow) %v354_v40, 32  ;;  %385 = vst.msk [vmem:[%s1094_s2 + $0x40] sm:$0xff] %vm168_vm0, %v362_v2 }
  0xdc   :  { %564 = vrcp.f32 %v344_v3 }
  0xdd   :  { %v555_v37 = vpop.eup %554 }
  0xde   :  { %v366_v50 = vmul.f32 %v555_v37, %v819_v61 }
  0xdf   :  { %398 = vxpose.xlu0.b32.cont [6/16] (narrow) %v356_v33, 32 }
  0xe0   :  { %387 = vst.msk [vmem:[%s1094_s2 + $0x50] sm:$0xff] %vm168_vm0, %v366_v50 }
  0xe1   :  { %v557_v51 = vpop.eup %556 }
  0xe2   :  { %v559_v6 = vpop.eup %558  ;;  %v368_v9 = vmul.f32 %v557_v51, %v822_v62 }
  0xe3   :  { %399 = vxpose.xlu0.b32.cont [7/16] (narrow) %v358_v60, 32  ;;  %v370_v42 = vmul.f32 %v559_v6, %v841_v11 }
  0xe4   :  { %388 = vst.msk [vmem:[%s1094_s2 + $0x58] sm:$0xff] %vm168_vm0, %v368_v9 }
  0xe5   :  { %v561_v41 = vpop.eup %560  ;;  %389 = vst.msk [vmem:[%s1094_s2 + $0x60] sm:$0xff] %vm168_vm0, %v370_v42 }
  0xe6   :  { %v563_v61 = vpop.eup %562  ;;  %v372_v14 = vmul.f32 %v561_v41, %v835_v10 }
  0xe7   :  { %400 = vxpose.xlu0.b32.cont [8/16] (narrow) %v360_v55, 32  ;;  %v374_v62 = vmul.f32 %v563_v61, %v855_v12 }
  0xe8   :  { %390 = vst.msk [vmem:[%s1094_s2 + $0x68] sm:$0xff] %vm168_vm0, %v372_v14 }
  0xe9   :  { %v565_v11 = vpop.eup %564  ;;  %391 = vst.msk [vmem:[%s1094_s2 + $0x70] sm:$0xff] %vm168_vm0, %v374_v62 }
  0xea   :  { %v376_v53 = vmul.f32 %v565_v11, %v849_v18 }
  0xeb   :  { %401 = vxpose.xlu0.b32.cont [9/16] (narrow) %v362_v2, 32 }
  0xec   :  { %392 = vst.msk [vmem:[%s1094_s2 + $0x78] sm:$0xff] %vm168_vm0, %v376_v53 }
  0xef   :  { %402 = vxpose.xlu0.b32.cont [10/16] (narrow) %v364_v1, 32 }
  0xf3   :  { %403 = vxpose.xlu0.b32.cont [11/16] (narrow) %v366_v50, 32 }
  0xf7   :  { %404 = vxpose.xlu0.b32.cont [12/16] (narrow) %v368_v9, 32 }
  0xfb   :  { %405 = vxpose.xlu0.b32.cont [13/16] (narrow) %v370_v42, 32 }
  0xff   :  { %406 = vxpose.xlu0.b32.cont [14/16] (narrow) %v372_v14, 32 }
 0x103   :  { %407 = vxpose.xlu0.b32.cont [15/16] (narrow) %v374_v62, 32 }
 0x107   :  { %408 = vxpose.xlu0.b32.end [16/16] (narrow) %v376_v53, 32 }
 0x147   :  { %v409_v10 = vpop.trf.xlu0 }
 0x148   :  { %425 = vst [vmem:[#allocation2] sm:$0xff] %v409_v10 }
 0x14b   :  { %v410_v12 = vpop.trf.xlu0 }
 0x14c   :  { %426 = vst [vmem:[#allocation2 + $0x8] sm:$0xff] %v410_v12 }
 0x14f   :  { %v411_v18 = vpop.trf.xlu0 }
 0x150   :  { %427 = vst [vmem:[#allocation2 + $0x10] sm:$0xff] %v411_v18 }
 0x153   :  { %v412_v49 = vpop.trf.xlu0 }
 0x154   :  { %428 = vst [vmem:[#allocation2 + $0x18] sm:$0xff] %v412_v49 }
 0x155   :  { %577 = shalt.err (!%p574_p4)
}
 0x156   :  { %s589_s2 = smov 128   ;;  %s590_s25 = smov 8  }
 0x157   :  { %442 = dma.vmem_to_hbm [thread:$0]  %s437_s23, 512, %s1095_s3, [#allocation3], %s589_s2, %s589_s2, %s590_s25  }
 0x158   :  { %586 = dma.done.wait [#allocation3], 512  }
 0x159   :  { %587 = vsyncadd [#allocation3], 4294966784 }
 0x15a   :  { %448 = vsyncpa [#allocation3], 1 }

</bundles_post_ra>
